<compile_context>
chip_gen: v5e
topology: v5e:2x2
jax: 0.10.0
libtpu: 0.0.40
codegen_flags: <defaults>
</compile_context>

<pallas_src>
import jax
import jax.numpy as jnp
from jax.experimental import pallas as pl
from jax.experimental.pallas import tpu as pltpu


def _recal_kernel(x_ref, w_ref, b_ref, m_ref, o_ref):
    # x_ref: (tm, L)   w_ref: (L, L)   b_ref: (1, L)   m_ref: (tm, L)
    x = x_ref[...]
    w = w_ref[...]
    b = b_ref[...]
    mask = m_ref[...]

    # Linear: x @ W_blockdiag + b  (MXU, f32 accumulate).  Block-diagonal W
    # keeps the `pack` tokens sharing a vector row independent.
    y = jnp.dot(x, w, preferred_element_type=jnp.float32) + b

    # Softplus (matches torch.nn.Softplus with beta=1, threshold=20):
    #   y > 20 -> y, else log1p(exp(y))  (stable form; clamp unselected branch)
    sp = jnp.where(y > 20.0, y, jnp.log1p(jnp.exp(jnp.minimum(y, 20.0))))

    o_ref[...] = (sp * (1.0 - mask)).astype(o_ref.dtype)


def recalibration(nr_feat, mask, weight, bias, *, tm=512):
    """Recalibration forward.

    nr_feat, mask: (B, S, D) float32 (mask assumed same shape as nr_feat)
    weight: (D, D) already transposed to (in, out) so the kernel does x @ W + b
    bias:   (D,)
    """
    B, S, D = nr_feat.shape
    M = B * S

    # --- lane packing: fold `pack` tokens into one 128-lane vector row -------
    pack = 128 // D if (D <= 128 and 128 % D == 0) else 1
    lanes = pack * D

    x2 = nr_feat.reshape(M, D)
    m2 = mask.reshape(M, D)

    rows = -(-M // pack)                      # ceil(M / pack)
    pad_tok = rows * pack - M
    if pad_tok:
        x2 = jnp.pad(x2, ((0, pad_tok), (0, 0)))
        m2 = jnp.pad(m2, ((0, pad_tok), (0, 0)))
    xp = x2.reshape(rows, lanes)
    mp = m2.reshape(rows, lanes)

    # --- row tiling: large tiles, pad instead of asserting divisibility ------
    rows8 = -(-rows // 8) * 8                 # sublane-align
    tm_eff = max(8, (min(tm, rows8) // 8) * 8)
    rows_pad = -(-rows // tm_eff) * tm_eff
    if rows_pad != rows:
        xp = jnp.pad(xp, ((0, rows_pad - rows), (0, 0)))
        mp = jnp.pad(mp, ((0, rows_pad - rows), (0, 0)))

    # --- block-diagonal lane-dense weight / tiled bias (built once, outside) -
    w_packed = jnp.kron(jnp.eye(pack, dtype=weight.dtype), weight)   # (L, L)
    b_packed = jnp.tile(bias, pack).reshape(1, lanes)                # (1, L)

    grid = (pl.cdiv(rows_pad, tm_eff),)

    cost = pl.CostEstimate(
        flops=2 * M * D * D,
        transcendentals=2 * M * D,
        bytes_accessed=3 * M * D * 4 + D * D * 4 + D * 4,
    )

    out_packed = pl.pallas_call(
        _recal_kernel,
        out_shape=jax.ShapeDtypeStruct((rows_pad, lanes), nr_feat.dtype),
        grid_spec=pltpu.PrefetchScalarGridSpec(
            num_scalar_prefetch=0,
            grid=grid,
            in_specs=[
                pl.BlockSpec((tm_eff, lanes), lambda i: (i, 0)),  # x tile
                pl.BlockSpec((lanes, lanes), lambda i: (0, 0)),   # weight (resident)
                pl.BlockSpec((1, lanes), lambda i: (0, 0)),       # bias   (resident)
                pl.BlockSpec((tm_eff, lanes), lambda i: (i, 0)),  # mask tile
            ],
            out_specs=pl.BlockSpec((tm_eff, lanes), lambda i: (i, 0)),
        ),
        compiler_params=pltpu.CompilerParams(
            dimension_semantics=("parallel",),
        ),
        cost_estimate=cost,
    )(xp, w_packed, b_packed, mp)

    out = out_packed.reshape(rows_pad * pack, D)[:M]
    return out.reshape(B, S, D)


def _reference(nr_feat, mask, weight, bias):
    y = jnp.einsum("bsd,de->bse", nr_feat, weight) + bias
    sp = jnp.where(y > 20.0, y, jnp.log1p(jnp.exp(jnp.minimum(y, 20.0))))
    return sp * (1.0 - mask)


def _run_case(key, B, S, D):
    k1, k2, k3, k4 = jax.random.split(key, 4)
    nr_feat = jax.random.normal(k1, (B, S, D), dtype=jnp.float32)
    mask = (jax.random.uniform(k2, (B, S, D)) > 0.5).astype(jnp.float32)

    bound = 1.0 / jnp.sqrt(D)
    # PyTorch weight is (out, in); we pre-transpose to (in, out) for x @ W.
    weight_t = jax.random.uniform(k3, (D, D), minval=-bound, maxval=bound,
                                  dtype=jnp.float32)
    bias = jax.random.uniform(k4, (D,), minval=-bound, maxval=bound,
                              dtype=jnp.float32)

    out = recalibration(nr_feat, mask, weight_t, bias)
    out = jax.block_until_ready(out)

    ref = _reference(nr_feat, mask, weight_t, bias)
    assert out.shape == (B, S, D)
    assert jnp.allclose(out, ref, atol=1e-5, rtol=1e-5), \
        f"mismatch vs reference for shape {(B, S, D)}"


if __name__ == "__main__":
    key = jax.random.PRNGKey(0)
    k_a, k_b = jax.random.split(key)

    # Main small case (dim = 32, matches nn.Linear(32, 32)).
    _run_case(k_a, B=2, S=8, D=32)
    # Non-divisible token count to exercise the pad/slice path.
    _run_case(k_b, B=3, S=5, D=32)

    print("KERNEL_OK")
</pallas_src>

<mosaic_0001>
module attributes {stable_mosaic.version = 11 : i64} {
  func.func @_recal_kernel(%arg0: i32, %arg1: memref<8x128xf32, #tpu.memory_space<vmem>>, %arg2: memref<128x128xf32, #tpu.memory_space<vmem>>, %arg3: memref<1x128xf32, #tpu.memory_space<vmem>>, %arg4: memref<8x128xf32, #tpu.memory_space<vmem>>, %arg5: memref<8x128xf32, #tpu.memory_space<vmem>>) attributes {dimension_semantics = [#tpu.dimension_semantics<parallel>], iteration_bounds = array<i64: 1>, scalar_prefetch = 0 : i64, scratch_operands = 0 : i64, tpu.core_type = #tpu.core_type<tc>, window_params = [{transform_indices = @transform_0, window_bounds = array<i64: 8, 128>}, {pipeline_mode = #tpu.pipeline_mode<synchronous>, transform_indices = @transform_1, window_bounds = array<i64: 128, 128>}, {pipeline_mode = #tpu.pipeline_mode<synchronous>, transform_indices = @transform_2, window_bounds = array<i64: 1, 128>}, {transform_indices = @transform_3, window_bounds = array<i64: 8, 128>}, {transform_indices = @transform_4, window_bounds = array<i64: 8, 128>}]} {
    %c0 = arith.constant 0 : index
    %c0_0 = arith.constant 0 : index
    %0 = vector.load %arg1[%c0, %c0_0] : memref<8x128xf32, #tpu.memory_space<vmem>>, vector<8x128xf32>
    %c0_1 = arith.constant 0 : index
    %c0_2 = arith.constant 0 : index
    %1 = vector.load %arg2[%c0_1, %c0_2] : memref<128x128xf32, #tpu.memory_space<vmem>>, vector<128x128xf32>
    %c0_3 = arith.constant 0 : index
    %c0_4 = arith.constant 0 : index
    %2 = vector.load %arg3[%c0_3, %c0_4] : memref<1x128xf32, #tpu.memory_space<vmem>>, vector<1x128xf32>
    %c0_5 = arith.constant 0 : index
    %c0_6 = arith.constant 0 : index
    %3 = vector.load %arg4[%c0_5, %c0_6] : memref<8x128xf32, #tpu.memory_space<vmem>>, vector<8x128xf32>
    %cst = arith.constant dense<0.000000e+00> : vector<8x128xf32>
    %4 = tpu.matmul %0, %1, %cst {dimension_numbers = #tpu.dot_dimension_numbers<[1], [0], [0], [1], [0, 0, 1, 1], [], []>} : vector<8x128xf32>, vector<128x128xf32>, vector<8x128xf32> -> vector<8x128xf32>
    %5 = vector.broadcast %2 : vector<1x128xf32> to vector<8x128xf32>
    %6 = arith.addf %4, %5 : vector<8x128xf32>
    %cst_7 = arith.constant 2.000000e+01 : f32
    %7 = vector.broadcast %cst_7 : f32 to vector<8x128xf32>
    %8 = arith.cmpf ogt, %6, %7 : vector<8x128xf32>
    %cst_8 = arith.constant 2.000000e+01 : f32
    %9 = vector.broadcast %cst_8 : f32 to vector<8x128xf32>
    %10 = arith.minimumf %6, %9 : vector<8x128xf32>
    %11 = math.exp %10 : vector<8x128xf32>
    %12 = math.log1p %11 : vector<8x128xf32>
    %13 = arith.select %8, %6, %12 : vector<8x128xi1>, vector<8x128xf32>
    %cst_9 = arith.constant 1.000000e+00 : f32
    %14 = vector.broadcast %cst_9 : f32 to vector<8x128xf32>
    %15 = arith.subf %14, %3 : vector<8x128xf32>
    %16 = arith.mulf %13, %15 : vector<8x128xf32>
    %c0_10 = arith.constant 0 : index
    %c0_11 = arith.constant 0 : index
    %17 = vector.load %arg5[%c0_10, %c0_11] : memref<8x128xf32, #tpu.memory_space<vmem>>, vector<8x128xf32>
    tpu.vector_store %arg5[%c0_10, %c0_11], %16 {strides = array<i32>} : memref<8x128xf32, #tpu.memory_space<vmem>>, vector<8x128xf32>,
    return
  }
  func.func @transform_0(%arg0: i32) -> (i32, i32) {
    %c0_i32 = arith.constant 0 : i32
    %c0_i32_0 = arith.constant 0 : i32
    return %arg0, %c0_i32 : i32, i32
  }
  func.func @transform_1(%arg0: i32) -> (i32, i32) {
    %c0_i32 = arith.constant 0 : i32
    %c0_i32_0 = arith.constant 0 : i32
    %c0_i32_1 = arith.constant 0 : i32
    return %c0_i32, %c0_i32_0 : i32, i32
  }
  func.func @transform_2(%arg0: i32) -> (i32, i32) {
    %c0_i32 = arith.constant 0 : i32
    %c0_i32_0 = arith.constant 0 : i32
    %c0_i32_1 = arith.constant 0 : i32
    return %c0_i32, %c0_i32_0 : i32, i32
  }
  func.func @transform_3(%arg0: i32) -> (i32, i32) {
    %c0_i32 = arith.constant 0 : i32
    %c0_i32_0 = arith.constant 0 : i32
    return %arg0, %c0_i32 : i32, i32
  }
  func.func @transform_4(%arg0: i32) -> (i32, i32) {
    %c0_i32 = arith.constant 0 : i32
    %c0_i32_0 = arith.constant 0 : i32
    return %arg0, %c0_i32 : i32, i32
  }
}

</mosaic_0001>

<bundles_post_ra>
// kernel: tpu_custom_call.1
= control target key start
LH: loop header
LB: loop body
LE: loop exit
PB: predicated region body
PF: predicated region fallthrough
CT: control target
= control target key end

     0   :  { %9 = vsyncpa [#allocation3], 0  ;;  %s297_s0 = inlined_call_operand.hbm [shape: f32[8,128], index: 0, kind: input, shape index: {}]   ;;  %s298_s1 = inlined_call_operand.hbm [shape: f32[128,128], index: 1, kind: input, shape index: {}]   ;;  %s299_s2 = inlined_call_operand.vmem [shape: f32[1,128], index: 2, kind: input, shape index: {}]   ;;  %s300_s3 = inlined_call_operand.hbm [shape: f32[8,128], index: 3, kind: input, shape index: {}]   ;;  %s301_s4 = inlined_call_operand.hbm [shape: f32[8,128], index: 4, kind: output, shape index: {}]  }
   0x1   :  { %10 = vsyncpa [#allocation6], 0  ;;  %s27_s17 = sshll.u32 %s298_s1, 4  ;;  %s28_s17 = int_to_ptr.hbm [resolvable:$true] %s27_s17 }
   0x2   :  { %11 = vsyncpa [#allocation4], 0  ;;  %s251_s18 = smov [#allocation5]   ;;  %s17_s22 = sshll.u32 %s297_s0, 4  ;;  %s18_s22 = int_to_ptr.hbm [resolvable:$true] %s17_s22 }
   0x3   :  { %s29_s19 = sshll.u32 %s251_s18, 4  ;;  %s252_s23 = smov 128   ;;  %s30_s19 = int_to_ptr.vmem [resolvable:$true] %s29_s19 }
   0x4   :  { %s253_s24 = smov 8   ;;  %s254_s25 = smov [#allocation2]  }
   0x5   :  { %35 = dma.hbm_to_vmem [thread:$0]  %s28_s17, 2048, %s30_s19, [#allocation6], %s252_s23, %s252_s23, %s253_s24  }
   0x6   :  { %s19_s26 = sshll.u32 %s254_s25, 4  ;;  %s43_s29 = sshll.u32 %s300_s3, 4  ;;  %s20_s26 = int_to_ptr.vmem [resolvable:$true] %s19_s26  ;;  %s44_s29 = int_to_ptr.hbm [resolvable:$true] %s43_s29 }
   0x7   :  { %22 = dma.hbm_to_vmem [thread:$0]  %s18_s22, 128, %s20_s26, [#allocation3]  }
   0x8   :  { %s255_s1 = smov [#allocation7]  }
   0x9   :  { %s45_s30 = sshll.u32 %s255_s1, 4  ;;  %s46_s30 = int_to_ptr.vmem [resolvable:$true] %s45_s30 }
   0xa   :  { %48 = dma.hbm_to_vmem [thread:$0]  %s44_s29, 128, %s46_s30, [#allocation6]  }
   0xb   :  { %245 = dma.done.wait [#allocation3], 128  }
   0xc   :  { %246 = vsyncadd [#allocation3], 4294967168 }
   0xd   :  { %247 = dma.done.wait [#allocation6], 2176  }
   0xe   :  { %248 = vsyncadd [#allocation6], 4294965120  ;;  %v77_v0 = vld [vmem:[#allocation5 + $0x78] sm:$0xff]  ;;  %v76_v1 = vld [vmem:[#allocation5 + $0x70] sm:$0xff]  ;;  %s256_s5 = smov [#allocation8]   ;;  %s127_s8 = sshll.u32 %s301_s4, 4  ;;  %s128_s8 = int_to_ptr.hbm [resolvable:$true] %s127_s8 }
   0xf   :  { %83 = vmatpush.msra.mxu0 %v77_v0  ;;  %v75_v2 = vld [vmem:[#allocation5 + $0x68] sm:$0xff]  ;;  %v74_v3 = vld [vmem:[#allocation5 + $0x60] sm:$0xff]  ;;  %v73_v4 = vld [vmem:[#allocation5 + $0x58] sm:$0xff]  ;;  %s125_s6 = sshll.u32 %s256_s5, 4  ;;  %s126_s6 = int_to_ptr.vmem [resolvable:$true] %s125_s6 }
  0x10   :  { %v72_v5 = vld [vmem:[#allocation5 + $0x50] sm:$0xff]  ;;  %v71_v6 = vld [vmem:[#allocation5 + $0x48] sm:$0xff]  ;;  %v70_v7 = vld [vmem:[#allocation5 + $0x40] sm:$0xff] }
  0x11   :  { %84 = vmatpush.msra.mxu0 %v76_v1  ;;  %v69_v8 = vld [vmem:[#allocation5 + $0x38] sm:$0xff]  ;;  %v68_v9 = vld [vmem:[#allocation5 + $0x30] sm:$0xff]  ;;  %v67_v10 = vld [vmem:[#allocation5 + $0x28] sm:$0xff] }
  0x12   :  { %v66_v11 = vld [vmem:[#allocation5 + $0x20] sm:$0xff]  ;;  %v65_v12 = vld [vmem:[#allocation5 + $0x18] sm:$0xff]  ;;  %v64_v13 = vld [vmem:[#allocation5 + $0x10] sm:$0xff] }
  0x13   :  { %85 = vmatpush.msra.mxu0 %v75_v2  ;;  %v63_v14 = vld [vmem:[#allocation5 + $0x8] sm:$0xff]  ;;  %v62_v15 = vld [vmem:[#allocation5] sm:$0xff]  ;;  %v61_v16 = vld [vmem:[#allocation2] sm:$0xff] }
  0x14   :  { %v144_v17 = vld [vmem:[%s299_s2] ss:$0 sm:$0xff]  ;;  %v79_v27 = vld [vmem:[#allocation7] sm:$0xff] }
  0x15   :  { %86 = vmatpush.msra.mxu0 %v74_v3  ;;  %v117_v31 = vsub.f32 1.0, %v79_v27 }
  0x17   :  { %87 = vmatpush.msra.mxu0 %v73_v4 }
  0x19   :  { %88 = vmatpush.msra.mxu0 %v72_v5 }
  0x1b   :  { %89 = vmatpush.msra.mxu0 %v71_v6 }
  0x1d   :  { %90 = vmatpush.msra.mxu0 %v70_v7 }
  0x1f   :  { %91 = vmatpush.msra.mxu0 %v69_v8 }
  0x21   :  { %92 = vmatpush.msra.mxu0 %v68_v9 }
  0x23   :  { %93 = vmatpush.msra.mxu0 %v67_v10 }
  0x25   :  { %94 = vmatpush.msra.mxu0 %v66_v11 }
  0x27   :  { %95 = vmatpush.msra.mxu0 %v65_v12 }
  0x29   :  { %96 = vmatpush.msra.mxu0 %v64_v13 }
  0x2b   :  { %97 = vmatpush.msra.mxu0 %v63_v14 }
  0x2d   :  { %98 = vmatpush.msra.mxu0 %v62_v15 }
  0x2e   :  { %99 = vmatmul.f32.vlgmr.msra.gmra.mxu0 %v61_v16 }
  0xab   :  { %v100_v18 = vpop.f32.mrf.mxu0 }
  0xac   :  { %v101_v19 = vadd.f32 %v144_v17, %v100_v18 }
  0xae   :  { %v104_v20 = vmin.f32 %v101_v19, 20.0  ;;  %vm103_vm1 = vcmp.gt.f32.partialorder %v101_v19, 20.0 }
  0xb0   :  { %v105_v21 = vmul.f32 1.442695, %v104_v20 }
  0xb2   :  { %145 = vpow2.f32 %v105_v21 }
  0xb8   :  { %v146_v22 = vpop.eup %145 }
  0xb9   :  { %v107_v23 = vadd.f32 1.0, %v146_v22  ;;  %v110_v24 = vmul.f32 -0.5, %v146_v22  ;;  %v113_v26 = vand.u32 2147483647, %v146_v22 }
  0xbb   :  { %147 = vlog2.f32 %v107_v23  ;;  %v111_v25 = vadd.f32 1.0, %v110_v24  ;;  %vm114_vm0 = vcmp.lt.f32.partialorder %v113_v26, 0.0004427343 }
  0xbd   :  { %v112_v30 = vmul.f32 %v146_v22, %v111_v25 }
  0xc1   :  { %v148_v28 = vpop.eup %147 }
  0xc2   :  { %v109_v29 = vmul.f32 0.6931472, %v148_v28 }
  0xc4   :  { %v115_v32 = vsel %vm114_vm0, %v112_v30, %v109_v29 }
  0xc5   :  { %v116_v33 = vsel %vm103_vm1, %v101_v19, %v115_v32 }
  0xc6   :  { %v118_v34 = vmul.f32 %v117_v31, %v116_v33 }
  0xc8   :  { %119 = vst [vmem:[#allocation8] sm:$0xff] %v118_v34 }
  0xc9   :  { %130 = dma.vmem_to_hbm [thread:$0]  %s126_s6, 128, %s128_s8, [#allocation4]  }
  0xca   :  { %249 = dma.done.wait [#allocation4], 128  }
  0xcb   :  { %250 = vsyncadd [#allocation4], 4294967168 }
  0xcc   :  { %135 = vsyncpa [#allocation3], 1 }
  0xcd   :  { %136 = vsyncpa [#allocation6], 1 }
  0xce   :  { %137 = vsyncpa [#allocation4], 1 }

</bundles_post_ra>
